<compile_context>
chip_gen: v7x
topology: tpu7x:2x2x1
jax: 0.10.0
libtpu: 0.0.40
codegen_flags: <defaults>
</compile_context>

<pallas_src>
import functools

import jax
import jax.numpy as jnp
from jax.experimental import pallas as pl
from jax.experimental.pallas import tpu as pltpu


def _round_up(x, m):
    return (x + m - 1) // m * m


# ----------------------------------------------------------------------------
# Fused CA_NET kernel: shared Linear + ReLU + mu/logvar split + reparametrize
# ----------------------------------------------------------------------------

def _ca_net_kernel(text_ref, audio_ref, w_ref, b_ref, eps_ref,
                   c_ref, mu_ref, logvar_ref, *, c_dim):
    C = c_dim
    w = w_ref[...]                       # (T, 2C), kept VMEM-resident across tiles
    b = b_ref[...]                       # (1, 2C)

    x = jnp.dot(text_ref[...], w, preferred_element_type=jnp.float32) + b
    y = jnp.dot(audio_ref[...], w, preferred_element_type=jnp.float32) + b
    x = jnp.maximum(x, 0.0)              # ReLU
    y = jnp.maximum(y, 0.0)

    mu_x, lv_x = x[:, :C], x[:, C:]      # text  -> first half of mu / logvar
    mu_y, lv_y = y[:, :C], y[:, C:]      # audio -> second half
    eps = eps_ref[...]

    # Write each output half-wise with static, lane-aligned slices (avoids an
    # in-kernel concatenate; both halves are 128-lane aligned when C % 128 == 0).
    mu_ref[:, :C] = mu_x
    mu_ref[:, C:] = mu_y
    logvar_ref[:, :C] = lv_x
    logvar_ref[:, C:] = lv_y
    c_ref[:, :C] = eps[:, :C] * jnp.exp(0.5 * lv_x) + mu_x
    c_ref[:, C:] = eps[:, C:] * jnp.exp(0.5 * lv_y) + mu_y


def ca_net_forward(text_embedding, audio_embedding, params, eps, *, max_tile_b=512):
    """Fused CA_NET forward. Returns (c_code, mu, logvar), each (B, 2*c_dim)."""
    w = params["w"]                      # (t_dim, 2*c_dim)  (torch weight.T)
    b = params["b"]                      # (1, 2*c_dim)
    B, T = text_embedding.shape
    C2 = w.shape[1]
    C = C2 // 2

    # Tile the batch axis: TILE_B multiple of 8 (pad if needed), capped at 512.
    if B <= max_tile_b:
        bp = _round_up(B, 8)
        tile_b = bp
    else:
        tile_b = max_tile_b
        bp = _round_up(B, tile_b)
    pad = bp - B

    text = text_embedding.astype(jnp.float32)
    audio = audio_embedding.astype(jnp.float32)
    eps_f = eps.astype(jnp.float32)
    if pad:
        text = jnp.pad(text, ((0, pad), (0, 0)))
        audio = jnp.pad(audio, ((0, pad), (0, 0)))
        eps_f = jnp.pad(eps_f, ((0, pad), (0, 0)))

    grid = (bp // tile_b,)

    # Explicit VMEM budget: double-buffered input tiles + weight + bias +
    # double-buffered output tiles, plus headroom. Clamped to a range that is
    # safe on v5e (16 MiB scoped default) through v7x (64 MiB physical).
    f32 = 4
    est = f32 * (2 * (2 * tile_b * T + tile_b * C2 + T * C2 + 8 * C2)
                 + 2 * 3 * tile_b * C2) + (1 << 20)
    vmem_limit = int(min(max(est, 8 << 20), 48 << 20))

    row_in = pl.BlockSpec((tile_b, T), lambda i: (i, 0))
    row_eps = pl.BlockSpec((tile_b, C2), lambda i: (i, 0))
    row_out = pl.BlockSpec((tile_b, C2), lambda i: (i, 0))

    c_code, mu, logvar = pl.pallas_call(
        functools.partial(_ca_net_kernel, c_dim=C),
        out_shape=[jax.ShapeDtypeStruct((bp, C2), jnp.float32)] * 3,
        grid=grid,
        in_specs=[
            row_in,                                   # text tile
            row_in,                                   # audio tile
            pl.BlockSpec((T, C2), lambda i: (0, 0)),  # shared fc weight
            pl.BlockSpec((1, C2), lambda i: (0, 0)),  # fc bias
            row_eps,                                  # reparametrize noise tile
        ],
        out_specs=[row_out, row_out, row_out],
        compiler_params=pltpu.CompilerParams(
            dimension_semantics=("parallel",),
            vmem_limit_bytes=vmem_limit,
        ),
    )(text, audio, w, b, eps_f)

    if pad:
        c_code, mu, logvar = c_code[:B], mu[:B], logvar[:B]
    return c_code, mu, logvar


# ----------------------------------------------------------------------------
# Parameters
# ----------------------------------------------------------------------------

def init_params(key, t_dim, c_dim):
    """nn.Linear(t_dim, 2*c_dim) params; weight stored pre-transposed (T, 2C)."""
    kw, kb = jax.random.split(key)
    bound = 1.0 / (t_dim ** 0.5)
    w = jax.random.uniform(kw, (t_dim, 2 * c_dim), jnp.float32, -bound, bound)
    b = jax.random.uniform(kb, (1, 2 * c_dim), jnp.float32, -bound, bound)
    return {"w": w, "b": b}


# ----------------------------------------------------------------------------
# Main
# ----------------------------------------------------------------------------

if __name__ == "__main__":
    key = jax.random.PRNGKey(0)
    k_text, k_audio, k_eps, k_par = jax.random.split(key, 4)

    # Small config: DIMENSION=256, CONDITION_DIM=128, batch=4.
    batch, t_dim, c_dim = 4, 256, 128
    text = jax.random.normal(k_text, (batch, t_dim), jnp.float32)
    audio = jax.random.normal(k_audio, (batch, t_dim), jnp.float32)
    eps = jax.random.normal(k_eps, (batch, 2 * c_dim), jnp.float32)
    params = init_params(k_par, t_dim, c_dim)

    fwd = jax.jit(ca_net_forward)
    c_code, mu, logvar = fwd(text, audio, params, eps)
    c_code = jax.block_until_ready(c_code)

    # Pure-JAX reference for correctness.
    x = jax.nn.relu(text @ params["w"] + params["b"])
    y = jax.nn.relu(audio @ params["w"] + params["b"])
    mu_ref = jnp.concatenate([x[:, :c_dim], y[:, :c_dim]], axis=1)
    lv_ref = jnp.concatenate([x[:, c_dim:], y[:, c_dim:]], axis=1)
    c_ref = eps * jnp.exp(0.5 * lv_ref) + mu_ref

    assert c_code.shape == (batch, 2 * c_dim), c_code.shape
    assert mu.shape == (batch, 2 * c_dim) and logvar.shape == (batch, 2 * c_dim)
    assert bool(jnp.all(jnp.isfinite(c_code)))
    assert float(jnp.max(jnp.abs(mu - mu_ref))) < 2e-2
    assert float(jnp.max(jnp.abs(logvar - lv_ref))) < 2e-2
    assert float(jnp.max(jnp.abs(c_code - c_ref))) < 5e-2
    print("KERNEL_OK")
</pallas_src>

<mosaic_0001>
module attributes {stable_mosaic.version = 11 : i64} {
  func.func @_ca_net_kernel(%arg0: i32, %arg1: memref<8x256xf32, #tpu.memory_space<vmem>>, %arg2: memref<8x256xf32, #tpu.memory_space<vmem>>, %arg3: memref<256x256xf32, #tpu.memory_space<vmem>>, %arg4: memref<1x256xf32, #tpu.memory_space<vmem>>, %arg5: memref<8x256xf32, #tpu.memory_space<vmem>>, %arg6: memref<8x256xf32, #tpu.memory_space<vmem>>, %arg7: memref<8x256xf32, #tpu.memory_space<vmem>>, %arg8: memref<8x256xf32, #tpu.memory_space<vmem>>) attributes {dimension_semantics = [#tpu.dimension_semantics<parallel>], iteration_bounds = array<i64: 1>, scalar_prefetch = 0 : i64, scratch_operands = 0 : i64, tpu.core_type = #tpu.core_type<tc>, window_params = [{transform_indices = @transform_0, window_bounds = array<i64: 8, 256>}, {transform_indices = @transform_1, window_bounds = array<i64: 8, 256>}, {pipeline_mode = #tpu.pipeline_mode<synchronous>, transform_indices = @transform_2, window_bounds = array<i64: 256, 256>}, {pipeline_mode = #tpu.pipeline_mode<synchronous>, transform_indices = @transform_3, window_bounds = array<i64: 1, 256>}, {transform_indices = @transform_4, window_bounds = array<i64: 8, 256>}, {transform_indices = @transform_5, window_bounds = array<i64: 8, 256>}, {transform_indices = @transform_6, window_bounds = array<i64: 8, 256>}, {transform_indices = @transform_7, window_bounds = array<i64: 8, 256>}]} {
    %c0 = arith.constant 0 : index
    %c0_0 = arith.constant 0 : index
    %0 = vector.load %arg3[%c0, %c0_0] : memref<256x256xf32, #tpu.memory_space<vmem>>, vector<256x256xf32>
    %c0_1 = arith.constant 0 : index
    %c0_2 = arith.constant 0 : index
    %1 = vector.load %arg4[%c0_1, %c0_2] : memref<1x256xf32, #tpu.memory_space<vmem>>, vector<1x256xf32>
    %c0_3 = arith.constant 0 : index
    %c0_4 = arith.constant 0 : index
    %2 = vector.load %arg1[%c0_3, %c0_4] : memref<8x256xf32, #tpu.memory_space<vmem>>, vector<8x256xf32>
    %cst = arith.constant dense<0.000000e+00> : vector<8x256xf32>
    %3 = tpu.matmul %2, %0, %cst {dimension_numbers = #tpu.dot_dimension_numbers<[1], [0], [0], [1], [0, 0, 1, 1], [], []>} : vector<8x256xf32>, vector<256x256xf32>, vector<8x256xf32> -> vector<8x256xf32>
    %4 = vector.broadcast %1 : vector<1x256xf32> to vector<8x256xf32>
    %5 = arith.addf %3, %4 : vector<8x256xf32>
    %c0_5 = arith.constant 0 : index
    %c0_6 = arith.constant 0 : index
    %6 = vector.load %arg2[%c0_5, %c0_6] : memref<8x256xf32, #tpu.memory_space<vmem>>, vector<8x256xf32>
    %cst_7 = arith.constant dense<0.000000e+00> : vector<8x256xf32>
    %7 = tpu.matmul %6, %0, %cst_7 {dimension_numbers = #tpu.dot_dimension_numbers<[1], [0], [0], [1], [0, 0, 1, 1], [], []>} : vector<8x256xf32>, vector<256x256xf32>, vector<8x256xf32> -> vector<8x256xf32>
    %8 = vector.broadcast %1 : vector<1x256xf32> to vector<8x256xf32>
    %9 = arith.addf %7, %8 : vector<8x256xf32>
    %cst_8 = arith.constant 0.000000e+00 : f32
    %10 = vector.broadcast %cst_8 : f32 to vector<8x256xf32>
    %11 = arith.maximumf %5, %10 : vector<8x256xf32>
    %cst_9 = arith.constant 0.000000e+00 : f32
    %12 = vector.broadcast %cst_9 : f32 to vector<8x256xf32>
    %13 = arith.maximumf %9, %12 : vector<8x256xf32>
    %14 = vector.extract_strided_slice %11 {offsets = [0, 0], sizes = [8, 128], strides = [1, 1]} : vector<8x256xf32> to vector<8x128xf32>
    %15 = vector.extract_strided_slice %11 {offsets = [0, 128], sizes = [8, 128], strides = [1, 1]} : vector<8x256xf32> to vector<8x128xf32>
    %16 = vector.extract_strided_slice %13 {offsets = [0, 0], sizes = [8, 128], strides = [1, 1]} : vector<8x256xf32> to vector<8x128xf32>
    %17 = vector.extract_strided_slice %13 {offsets = [0, 128], sizes = [8, 128], strides = [1, 1]} : vector<8x256xf32> to vector<8x128xf32>
    %c0_10 = arith.constant 0 : index
    %c0_11 = arith.constant 0 : index
    %18 = vector.load %arg5[%c0_10, %c0_11] : memref<8x256xf32, #tpu.memory_space<vmem>>, vector<8x256xf32>
    %c0_12 = arith.constant 0 : index
    %c0_13 = arith.constant 0 : index
    %19 = vector.load %arg7[%c0_12, %c0_13] : memref<8x256xf32, #tpu.memory_space<vmem>>, vector<8x128xf32>
    tpu.vector_store %arg7[%c0_12, %c0_13], %14 {strides = array<i32>} : memref<8x256xf32, #tpu.memory_space<vmem>>, vector<8x128xf32>,
    %c0_14 = arith.constant 0 : index
    %c128 = arith.constant 128 : index
    %20 = vector.load %arg7[%c0_14, %c128] : memref<8x256xf32, #tpu.memory_space<vmem>>, vector<8x128xf32>
    tpu.vector_store %arg7[%c0_14, %c128], %16 {strides = array<i32>} : memref<8x256xf32, #tpu.memory_space<vmem>>, vector<8x128xf32>,
    %c0_15 = arith.constant 0 : index
    %c0_16 = arith.constant 0 : index
    %21 = vector.load %arg8[%c0_15, %c0_16] : memref<8x256xf32, #tpu.memory_space<vmem>>, vector<8x128xf32>
    tpu.vector_store %arg8[%c0_15, %c0_16], %15 {strides = array<i32>} : memref<8x256xf32, #tpu.memory_space<vmem>>, vector<8x128xf32>,
    %c0_17 = arith.constant 0 : index
    %c128_18 = arith.constant 128 : index
    %22 = vector.load %arg8[%c0_17, %c128_18] : memref<8x256xf32, #tpu.memory_space<vmem>>, vector<8x128xf32>
    tpu.vector_store %arg8[%c0_17, %c128_18], %17 {strides = array<i32>} : memref<8x256xf32, #tpu.memory_space<vmem>>, vector<8x128xf32>,
    %23 = vector.extract_strided_slice %18 {offsets = [0, 0], sizes = [8, 128], strides = [1, 1]} : vector<8x256xf32> to vector<8x128xf32>
    %cst_19 = arith.constant 5.000000e-01 : f32
    %24 = vector.broadcast %cst_19 : f32 to vector<8x128xf32>
    %25 = arith.mulf %24, %15 : vector<8x128xf32>
    %26 = math.exp %25 : vector<8x128xf32>
    %27 = arith.mulf %23, %26 : vector<8x128xf32>
    %28 = arith.addf %27, %14 : vector<8x128xf32>
    %c0_20 = arith.constant 0 : index
    %c0_21 = arith.constant 0 : index
    %29 = vector.load %arg6[%c0_20, %c0_21] : memref<8x256xf32, #tpu.memory_space<vmem>>, vector<8x128xf32>
    tpu.vector_store %arg6[%c0_20, %c0_21], %28 {strides = array<i32>} : memref<8x256xf32, #tpu.memory_space<vmem>>, vector<8x128xf32>,
    %30 = vector.extract_strided_slice %18 {offsets = [0, 128], sizes = [8, 128], strides = [1, 1]} : vector<8x256xf32> to vector<8x128xf32>
    %cst_22 = arith.constant 5.000000e-01 : f32
    %31 = vector.broadcast %cst_22 : f32 to vector<8x128xf32>
    %32 = arith.mulf %31, %17 : vector<8x128xf32>
    %33 = math.exp %32 : vector<8x128xf32>
    %34 = arith.mulf %30, %33 : vector<8x128xf32>
    %35 = arith.addf %34, %16 : vector<8x128xf32>
    %c0_23 = arith.constant 0 : index
    %c128_24 = arith.constant 128 : index
    %36 = vector.load %arg6[%c0_23, %c128_24] : memref<8x256xf32, #tpu.memory_space<vmem>>, vector<8x128xf32>
    tpu.vector_store %arg6[%c0_23, %c128_24], %35 {strides = array<i32>} : memref<8x256xf32, #tpu.memory_space<vmem>>, vector<8x128xf32>,
    return
  }
  func.func @transform_0(%arg0: i32) -> (i32, i32) {
    %c0_i32 = arith.constant 0 : i32
    %c0_i32_0 = arith.constant 0 : i32
    return %arg0, %c0_i32 : i32, i32
  }
  func.func @transform_1(%arg0: i32) -> (i32, i32) {
    %c0_i32 = arith.constant 0 : i32
    %c0_i32_0 = arith.constant 0 : i32
    return %arg0, %c0_i32 : i32, i32
  }
  func.func @transform_2(%arg0: i32) -> (i32, i32) {
    %c0_i32 = arith.constant 0 : i32
    %c0_i32_0 = arith.constant 0 : i32
    %c0_i32_1 = arith.constant 0 : i32
    return %c0_i32, %c0_i32_0 : i32, i32
  }
  func.func @transform_3(%arg0: i32) -> (i32, i32) {
    %c0_i32 = arith.constant 0 : i32
    %c0_i32_0 = arith.constant 0 : i32
    %c0_i32_1 = arith.constant 0 : i32
    return %c0_i32, %c0_i32_0 : i32, i32
  }
  func.func @transform_4(%arg0: i32) -> (i32, i32) {
    %c0_i32 = arith.constant 0 : i32
    %c0_i32_0 = arith.constant 0 : i32
    return %arg0, %c0_i32 : i32, i32
  }
  func.func @transform_5(%arg0: i32) -> (i32, i32) {
    %c0_i32 = arith.constant 0 : i32
    %c0_i32_0 = arith.constant 0 : i32
    return %arg0, %c0_i32 : i32, i32
  }
  func.func @transform_6(%arg0: i32) -> (i32, i32) {
    %c0_i32 = arith.constant 0 : i32
    %c0_i32_0 = arith.constant 0 : i32
    return %arg0, %c0_i32 : i32, i32
  }
  func.func @transform_7(%arg0: i32) -> (i32, i32) {
    %c0_i32 = arith.constant 0 : i32
    %c0_i32_0 = arith.constant 0 : i32
    return %arg0, %c0_i32 : i32, i32
  }
}

</mosaic_0001>

<bundles_post_ra>
// kernel: ca_net_forward.1
= control target key start
LH: loop header
LB: loop body
LE: loop exit
PB: predicated region body
PF: predicated region fallthrough
CT: control target
= control target key end

     0   :  { %13 = vsyncpa [#allocation3], 0  ;;  %s453_s24 = smov [#allocation2]   ;;  %s547_s0 = inlined_call_operand.vmem [shape: f32[8,256], index: 0, kind: input, shape index: {}]   ;;  %s548_s1 = inlined_call_operand.vmem [shape: f32[8,256], index: 1, kind: input, shape index: {}]   ;;  %s549_s2 = inlined_call_operand.hbm [shape: f32[256,256], index: 2, kind: input, shape index: {}]   ;;  %s550_s3 = inlined_call_operand.vmem [shape: f32[1,256], index: 3, kind: input, shape index: {}]   ;;  %s551_s4 = inlined_call_operand.vmem [shape: f32[8,256], index: 4, kind: input, shape index: {}]   ;;  %s552_s5 = inlined_call_operand.vmem [shape: f32[8,256], index: 5, kind: output, shape index: {0}]   ;;  %s553_s6 = inlined_call_operand.vmem [shape: f32[8,256], index: 6, kind: output, shape index: {1}]   ;;  %s554_s7 = inlined_call_operand.vmem [shape: f32[8,256], index: 7, kind: output, shape index: {2}]  }
   0x1   :  { %s23_s25 = sshll.u32 %s453_s24, 4  ;;  %s429_s28 = scalar_lea.hbm %s549_s2, 8192  ;;  %s24_s25 = int_to_ptr.vmem [resolvable:$true] %s23_s25 }
   0x2   :  { %p430_p0 = scmp.ne.s32.totalorder %s549_s2, %s429_s28  ;;  %p433_p1 = scmp.lt.u32.totalorder %s429_s28, %s549_s2 }
   0x4   :  { %p435_p2 = pnand %p433_p1, %p430_p0 }
   0x6   :  { %438 = shalt.err (!%p435_p2)
}
   0x7   :  { %s439_s10 = scalar_lea.vmem %s24_s25, 8192  ;;  %p444_p4 = scmp.lt.s32.totalorder %s24_s25, %s24_s25 }
   0x8   :  { %p440_p3 = scmp.ne.s32.totalorder %s24_s25, %s439_s10  ;;  %p445_p5 = scmp.lt.s32.totalorder %s439_s10, %s439_s10 }
   0xa   :  { %p446_p6 = por %p445_p5, %p444_p4 }
   0xc   :  { %p447_p7 = pnand %p446_p6, %p440_p3 }
   0xe   :  { %450 = shalt.err (!%p447_p7)
}
   0xf   :  { %s454_s11 = smov 256   ;;  %s455_s12 = smov 16  }
  0x10   :  { %29 = dma.hbm_to_vmem [thread:$0]  %s549_s2, 8192, %s24_s25, [#allocation3], %s454_s11, %s454_s11, %s455_s12  }
  0x11   :  { %451 = dma.done.wait [#allocation3], 8192  }
  0x12   :  { %452 = vsyncadd [#allocation3], 4294959104  ;;  %v38_v0 = vld [vmem:[#allocation2 + $0x8] sm:$0xff]  ;;  %v40_v1 = vld [vmem:[#allocation2 + $0x18] sm:$0xff] }
  0x13   :  { %v37_v2 = vld [vmem:[#allocation2] sm:$0xff]  ;;  %v294_v3 = vpack.c.bf16 %v40_v1, %v38_v0  ;;  %v39_v4 = vld [vmem:[#allocation2 + $0x10] sm:$0xff]  ;;  %v42_v5 = vld [vmem:[#allocation2 + $0x28] sm:$0xff] }
  0x14   :  { %v44_v6 = vld [vmem:[#allocation2 + $0x38] sm:$0xff]  ;;  %v296_v7 = vpack.c.bf16 %v39_v4, %v37_v2  ;;  %v41_v9 = vld [vmem:[#allocation2 + $0x20] sm:$0xff]  ;;  %v43_v10 = vld [vmem:[#allocation2 + $0x30] sm:$0xff] }
  0x15   :  { %v298_v8 = vpack.c.bf16 %v44_v6, %v42_v5  ;;  %v46_v11 = vld [vmem:[#allocation2 + $0x48] sm:$0xff]  ;;  %295 = vmatprep.subr.bf16.mxu0 %v294_v3  ;;  %359 = vmatprep.subr.bf16.mxu1 %v294_v3  ;;  %v48_v12 = vld [vmem:[#allocation2 + $0x58] sm:$0xff]  ;;  %v300_v13 = vpack.c.bf16 %v43_v10, %v41_v9  ;;  %v45_v15 = vld [vmem:[#allocation2 + $0x40] sm:$0xff] }
  0x16   :  { %297 = vmatpush1.bf16.msra.mxu0 %v296_v7  ;;  %361 = vmatpush1.bf16.msra.mxu1 %v296_v7  ;;  %v302_v14 = vpack.c.bf16 %v48_v12, %v46_v11  ;;  %v47_v16 = vld [vmem:[#allocation2 + $0x50] sm:$0xff]  ;;  %v50_v17 = vld [vmem:[#allocation2 + $0x68] sm:$0xff]  ;;  %v52_v18 = vld [vmem:[#allocation2 + $0x78] sm:$0xff] }
  0x17   :  { %299 = vmatprep.subr.bf16.mxu0 %v298_v8  ;;  %363 = vmatprep.subr.bf16.mxu1 %v298_v8  ;;  %v304_v19 = vpack.c.bf16 %v47_v16, %v45_v15  ;;  %v306_v20 = vpack.c.bf16 %v52_v18, %v50_v17  ;;  %v49_v21 = vld [vmem:[#allocation2 + $0x60] sm:$0xff]  ;;  %v51_v22 = vld [vmem:[#allocation2 + $0x70] sm:$0xff]  ;;  %v54_v23 = vld [vmem:[#allocation2 + $0x88] sm:$0xff] }
  0x18   :  { %v56_v24 = vld [vmem:[#allocation2 + $0x98] sm:$0xff]  ;;  %v308_v25 = vpack.c.bf16 %v51_v22, %v49_v21  ;;  %v53_v27 = vld [vmem:[#allocation2 + $0x80] sm:$0xff]  ;;  %v55_v28 = vld [vmem:[#allocation2 + $0x90] sm:$0xff] }
  0x19   :  { %v310_v26 = vpack.c.bf16 %v56_v24, %v54_v23  ;;  %v58_v29 = vld [vmem:[#allocation2 + $0xa8] sm:$0xff]  ;;  %v60_v30 = vld [vmem:[#allocation2 + $0xb8] sm:$0xff]  ;;  %v312_v31 = vpack.c.bf16 %v55_v28, %v53_v27  ;;  %v57_v33 = vld [vmem:[#allocation2 + $0xa0] sm:$0xff] }
  0x1a   :  { %301 = vmatpush1.bf16.msra.mxu0 %v300_v13  ;;  %365 = vmatpush1.bf16.msra.mxu1 %v300_v13  ;;  %v314_v32 = vpack.c.bf16 %v60_v30, %v58_v29  ;;  %v59_v34 = vld [vmem:[#allocation2 + $0xb0] sm:$0xff]  ;;  %v62_v35 = vld [vmem:[#allocation2 + $0xc8] sm:$0xff]  ;;  %v64_v36 = vld [vmem:[#allocation2 + $0xd8] sm:$0xff] }
  0x1b   :  { %303 = vmatprep.subr.bf16.mxu0 %v302_v14  ;;  %367 = vmatprep.subr.bf16.mxu1 %v302_v14  ;;  %v316_v37 = vpack.c.bf16 %v59_v34, %v57_v33  ;;  %v61_v38 = vld [vmem:[#allocation2 + $0xc0] sm:$0xff]  ;;  %v318_v39 = vpack.c.bf16 %v64_v36, %v62_v35  ;;  %v63_v40 = vld [vmem:[#allocation2 + $0xd0] sm:$0xff]  ;;  %v103_v41 = vld [vmem:[%s547_s0 + $0x8] sm:$0xff]  ;;  %v105_v36 = vlaneseq }
  0x1c   :  { %v187_v42 = vld [vmem:[%s548_s1 + $0x8] sm:$0xff]  ;;  %v68_v44 = vld [vmem:[#allocation2 + $0xf8] sm:$0xff]  ;;  %179 = vmatprep.mubr.f32.mxu0 %v103_v41  ;;  %v320_v45 = vpack.c.bf16 %v63_v40, %v61_v38  ;;  %v65_v47 = vld [vmem:[#allocation2 + $0xe0] sm:$0xff] }
  0x1d   :  { %v66_v43 = vld [vmem:[#allocation2 + $0xe8] sm:$0xff]  ;;  %252 = vmatprep.mubr.f32.mxu1 %v187_v42  ;;  %v67_v48 = vld [vmem:[#allocation2 + $0xf0] sm:$0xff]  ;;  %v72_v50 = vld [vmem:[#allocation2 + $0x118] sm:$0xff] }
  0x1e   :  { %305 = vmatpush1.bf16.msra.mxu0 %v304_v19  ;;  %369 = vmatpush1.bf16.msra.mxu1 %v304_v19  ;;  %v322_v46 = vpack.c.bf16 %v68_v44, %v66_v43  ;;  %v70_v49 = vld [vmem:[#allocation2 + $0x108] sm:$0xff]  ;;  %v324_v51 = vpack.c.bf16 %v67_v48, %v65_v47  ;;  %v69_v53 = vld [vmem:[#allocation2 + $0x100] sm:$0xff]  ;;  %v71_v54 = vld [vmem:[#allocation2 + $0x110] sm:$0xff] }
  0x1f   :  { %307 = vmatprep.subr.bf16.mxu0 %v306_v20  ;;  %371 = vmatprep.subr.bf16.mxu1 %v306_v20  ;;  %v326_v52 = vpack.c.bf16 %v72_v50, %v70_v49  ;;  %v74_v55 = vld [vmem:[#allocation2 + $0x128] sm:$0xff]  ;;  %v76_v56 = vld [vmem:[#allocation2 + $0x138] sm:$0xff]  ;;  %v328_v57 = vpack.c.bf16 %v71_v54, %v69_v53  ;;  %v73_v59 = vld [vmem:[#allocation2 + $0x120] sm:$0xff] }
  0x20   :  { %v330_v58 = vpack.c.bf16 %v76_v56, %v74_v55  ;;  %v75_v60 = vld [vmem:[#allocation2 + $0x130] sm:$0xff]  ;;  %v78_v61 = vld [vmem:[#allocation2 + $0x148] sm:$0xff]  ;;  %v80_v62 = vld [vmem:[#allocation2 + $0x158] sm:$0xff] }
  0x21   :  { %v332_v63 = vpack.c.bf16 %v75_v60, %v73_v59  ;;  %v334_v0 = vpack.c.bf16 %v80_v62, %v78_v61  ;;  %v77_v1 = vld [vmem:[#allocation2 + $0x140] sm:$0xff]  ;;  %v79_v2 = vld [vmem:[#allocation2 + $0x150] sm:$0xff]  ;;  %v82_v3 = vld [vmem:[#allocation2 + $0x168] sm:$0xff] }
  0x22   :  { %309 = vmatpush1.bf16.msra.mxu0 %v308_v25  ;;  %373 = vmatpush1.bf16.msra.mxu1 %v308_v25  ;;  %v84_v4 = vld [vmem:[#allocation2 + $0x178] sm:$0xff]  ;;  %v336_v5 = vpack.c.bf16 %v79_v2, %v77_v1  ;;  %v81_v7 = vld [vmem:[#allocation2 + $0x160] sm:$0xff]  ;;  %v83_v8 = vld [vmem:[#allocation2 + $0x170] sm:$0xff] }
  0x23   :  { %311 = vmatprep.subr.bf16.mxu0 %v310_v26  ;;  %375 = vmatprep.subr.bf16.mxu1 %v310_v26  ;;  %v338_v6 = vpack.c.bf16 %v84_v4, %v82_v3  ;;  %v86_v9 = vld [vmem:[#allocation2 + $0x188] sm:$0xff]  ;;  %v88_v10 = vld [vmem:[#allocation2 + $0x198] sm:$0xff]  ;;  %v340_v11 = vpack.c.bf16 %v83_v8, %v81_v7  ;;  %v85_v13 = vld [vmem:[#allocation2 + $0x180] sm:$0xff] }
  0x24   :  { %v342_v12 = vpack.c.bf16 %v88_v10, %v86_v9  ;;  %v87_v14 = vld [vmem:[#allocation2 + $0x190] sm:$0xff]  ;;  %v90_v15 = vld [vmem:[#allocation2 + $0x1a8] sm:$0xff]  ;;  %v92_v16 = vld [vmem:[#allocation2 + $0x1b8] sm:$0xff] }
  0x25   :  { %v344_v17 = vpack.c.bf16 %v87_v14, %v85_v13  ;;  %v346_v18 = vpack.c.bf16 %v92_v16, %v90_v15  ;;  %v89_v19 = vld [vmem:[#allocation2 + $0x1a0] sm:$0xff]  ;;  %v91_v20 = vld [vmem:[#allocation2 + $0x1b0] sm:$0xff]  ;;  %v94_v21 = vld [vmem:[#allocation2 + $0x1c8] sm:$0xff] }
  0x26   :  { %313 = vmatpush1.bf16.msra.mxu0 %v312_v31  ;;  %377 = vmatpush1.bf16.msra.mxu1 %v312_v31  ;;  %v96_v22 = vld [vmem:[#allocation2 + $0x1d8] sm:$0xff]  ;;  %v348_v23 = vpack.c.bf16 %v91_v20, %v89_v19  ;;  %v93_v25 = vld [vmem:[#allocation2 + $0x1c0] sm:$0xff]  ;;  %v95_v26 = vld [vmem:[#allocation2 + $0x1d0] sm:$0xff] }
  0x27   :  { %315 = vmatprep.subr.bf16.mxu0 %v314_v32  ;;  %379 = vmatprep.subr.bf16.mxu1 %v314_v32  ;;  %v350_v24 = vpack.c.bf16 %v96_v22, %v94_v21  ;;  %v98_v27 = vld [vmem:[#allocation2 + $0x1e8] sm:$0xff]  ;;  %v100_v28 = vld [vmem:[#allocation2 + $0x1f8] sm:$0xff]  ;;  %v352_v29 = vpack.c.bf16 %v95_v26, %v93_v25  ;;  %v97_v31 = vld [vmem:[#allocation2 + $0x1e0] sm:$0xff] }
  0x28   :  { %v354_v30 = vpack.c.bf16 %v100_v28, %v98_v27  ;;  %v99_v32 = vld [vmem:[#allocation2 + $0x1f0] sm:$0xff]  ;;  %v102_v34 = vld [vmem:[%s547_s0] sm:$0xff]  ;;  %v264_v60 = vld [vmem:[%s551_s4 + $0x8] sm:$0xff] }
  0x29   :  { %v356_v33 = vpack.c.bf16 %v99_v32, %v97_v31  ;;  %v186_v35 = vld [vmem:[%s548_s1] sm:$0xff] }
  0x2a   :  { %317 = vmatpush1.bf16.msra.mxu0 %v316_v37  ;;  %381 = vmatpush1.bf16.msra.mxu1 %v316_v37  ;;  %v106_v37 = vshrl.u32 %v105_v36, 7  ;;  %v263_v59 = vld [vmem:[%s551_s4] sm:$0xff] }
  0x2b   :  { %319 = vmatprep.subr.bf16.mxu0 %v318_v39  ;;  %383 = vmatprep.subr.bf16.mxu1 %v318_v39  ;;  %v101_v39 = vld [vmem:[%s550_s3] sm:$0x3] }
  0x2c   :  { %v107_v38 = vsub.s32 0, %v106_v37  ;;  %v111_v40 = vsub.s32 1, %v106_v37 }
  0x2e   :  { %321 = vmatpush1.bf16.msra.mxu0 %v320_v45  ;;  %385 = vmatpush1.bf16.msra.mxu1 %v320_v45  ;;  %v108_v41 = vrot.slane %v101_v39, %v107_v38  ;;  %v112_v42 = vrot.slane %v101_v39, %v111_v40 }
  0x2f   :  { %323 = vmatprep.subr.bf16.mxu0 %v322_v46  ;;  %387 = vmatprep.subr.bf16.mxu1 %v322_v46 }
  0x32   :  { %325 = vmatpush1.bf16.msra.mxu0 %v324_v51  ;;  %389 = vmatpush1.bf16.msra.mxu1 %v324_v51 }
  0x33   :  { %327 = vmatprep.subr.bf16.mxu0 %v326_v52  ;;  %391 = vmatprep.subr.bf16.mxu1 %v326_v52 }
  0x36   :  { %329 = vmatpush1.bf16.msra.mxu0 %v328_v57  ;;  %393 = vmatpush1.bf16.msra.mxu1 %v328_v57 }
  0x37   :  { %331 = vmatprep.subr.bf16.mxu0 %v330_v58  ;;  %395 = vmatprep.subr.bf16.mxu1 %v330_v58 }
  0x3a   :  { %333 = vmatpush1.bf16.msra.mxu0 %v332_v63  ;;  %397 = vmatpush1.bf16.msra.mxu1 %v332_v63 }
  0x3b   :  { %335 = vmatprep.subr.bf16.mxu0 %v334_v0  ;;  %399 = vmatprep.subr.bf16.mxu1 %v334_v0 }
  0x3e   :  { %337 = vmatpush1.bf16.msra.mxu0 %v336_v5  ;;  %401 = vmatpush1.bf16.msra.mxu1 %v336_v5 }
  0x3f   :  { %339 = vmatprep.subr.bf16.mxu0 %v338_v6  ;;  %403 = vmatprep.subr.bf16.mxu1 %v338_v6 }
  0x42   :  { %341 = vmatpush1.bf16.msra.mxu0 %v340_v11  ;;  %405 = vmatpush1.bf16.msra.mxu1 %v340_v11 }
  0x43   :  { %343 = vmatprep.subr.bf16.mxu0 %v342_v12  ;;  %407 = vmatprep.subr.bf16.mxu1 %v342_v12 }
  0x46   :  { %345 = vmatpush1.bf16.msra.mxu0 %v344_v17  ;;  %409 = vmatpush1.bf16.msra.mxu1 %v344_v17 }
  0x47   :  { %347 = vmatprep.subr.bf16.mxu0 %v346_v18  ;;  %411 = vmatprep.subr.bf16.mxu1 %v346_v18 }
  0x4a   :  { %349 = vmatpush1.bf16.msra.mxu0 %v348_v23  ;;  %413 = vmatpush1.bf16.msra.mxu1 %v348_v23 }
  0x4b   :  { %351 = vmatprep.subr.bf16.mxu0 %v350_v24  ;;  %415 = vmatprep.subr.bf16.mxu1 %v350_v24 }
  0x4e   :  { %353 = vmatpush1.bf16.msra.mxu0 %v352_v29  ;;  %417 = vmatpush1.bf16.msra.mxu1 %v352_v29 }
  0x4f   :  { %355 = vmatprep.subr.bf16.mxu0 %v354_v30  ;;  %419 = vmatprep.subr.bf16.mxu1 %v354_v30 }
  0x52   :  { %357 = vmatpush1.bf16.msra.mxu0 %v356_v33  ;;  %421 = vmatpush1.bf16.msra.mxu1 %v356_v33 }
  0x55   :  { %180 = vmatmul.mubr.f32.vlgmr.msra.gmra.mrb[0].mxu0 %v102_v34  ;;  %253 = vmatmul.mubr.f32.vlgmr.msra.gmra.mrb[0].mxu1 %v186_v35 }
 0x128   :  { %v181_v43 = vpop.f32.mrb[0].mxu0  ;;  %v254_v44 = vpop.f32.mrb[0].mxu1 }
 0x129   :  { %v182_v45 = vadd.f32 %v181_v43, %v108_v41  ;;  %v255_v46 = vadd.f32 %v254_v44, %v108_v41  ;;  %v183_v47 = vpop.f32.mrb[1].mxu0  ;;  %v256_v48 = vpop.f32.mrb[1].mxu1 }
 0x12a   :  { %v184_v49 = vadd.f32 %v183_v47, %v112_v42  ;;  %v257_v50 = vadd.f32 %v256_v48, %v112_v42 }
 0x12b   :  { %v259_v51 = vmax.f32 %v182_v45, 0.0  ;;  %v261_v52 = vmax.f32 %v255_v46, 0.0 }
 0x12c   :  { %v260_v53 = vmax.f32 %v184_v49, 0.0  ;;  %v262_v54 = vmax.f32 %v257_v50, 0.0 }
 0x12d   :  { %265 = vst [vmem:[%s553_s6] sm:$0xff] %v259_v51  ;;  %266 = vst [vmem:[%s553_s6 + $0x8] sm:$0xff] %v261_v52 }
 0x12e   :  { %267 = vst [vmem:[%s554_s7] sm:$0xff] %v260_v53  ;;  %v269_v55 = vmul.f32 0.5, %v260_v53  ;;  %268 = vst [vmem:[%s554_s7 + $0x8] sm:$0xff] %v262_v54  ;;  %v275_v56 = vmul.f32 0.5, %v262_v54 }
 0x130   :  { %v270_v57 = vmul.f32 1.442695, %v269_v55  ;;  %v276_v58 = vmul.f32 1.442695, %v275_v56 }
 0x132   :  { %425 = vpow2.f32 %v270_v57 }
 0x133   :  { %427 = vpow2.f32 %v276_v58 }
 0x13c   :  { %v426_v61 = vpop.eup %425 }
 0x13d   :  { %v428_v62 = vpop.eup %427  ;;  %v272_v63 = vmul.f32 %v426_v61, %v263_v59 }
 0x13e   :  { %v278_v0 = vmul.f32 %v428_v62, %v264_v60 }
 0x13f   :  { %v273_v1 = vadd.f32 %v272_v63, %v259_v51 }
 0x140   :  { %v279_v2 = vadd.f32 %v278_v0, %v261_v52 }
 0x141   :  { %274 = vst [vmem:[%s552_s5] sm:$0xff] %v273_v1 }
 0x142   :  { %280 = vst [vmem:[%s552_s5 + $0x8] sm:$0xff] %v279_v2 }
 0x143   :  { %293 = vsyncpa [#allocation3], 1 }

</bundles_post_ra>
